<compile_context>
chip_gen: v5e
topology: v5e:2x2
jax: 0.10.0
libtpu: 0.0.40
codegen_flags: <defaults>
</compile_context>

<pallas_src>
import jax
import jax.numpy as jnp
from jax.experimental import pallas as pl
from jax.experimental.pallas import tpu as pltpu


def _locked_dropout_kernel(x_ref, m_ref, o_ref):
    # x_ref: (1, tT, H)   m_ref: (1, 1, H)  -- broadcasts over the time tile.
    o_ref[...] = x_ref[...] * m_ref[...]


def _time_tile(T, H, itemsize):
    """Pick a sublane-aligned time tile giving ~2 MiB blocks."""
    sub = {4: 8, 2: 16, 1: 32}.get(itemsize, 8)
    target_bytes = 2 * 1024 * 1024
    rows = max(sub, (target_bytes // max(1, H * itemsize)) // sub * sub)
    if T <= rows:
        return T                      # full time dim -> always tiling-legal
    return max(sub, (rows // sub) * sub)


def locked_dropout(x, *, dropout=0.0, key=None, training=True):
    """JAX/Pallas equivalent of LockedDropout.forward."""
    if not training or dropout == 0:
        return x

    B, T, H = x.shape
    keep = 1.0 - float(dropout)
    if key is None:
        key = jax.random.PRNGKey(0)

    # Per-(batch, hidden) Bernoulli mask scaled by 1/keep, in x.dtype
    # (PyTorch builds the mask in x's dtype as well).
    m = jax.random.bernoulli(key, p=keep, shape=(B, 1, H))
    mask = (m.astype(jnp.float32) * (1.0 / keep)).astype(x.dtype)

    tT = _time_tile(T, H, jnp.dtype(x.dtype).itemsize)
    grid = (B, pl.cdiv(T, tT))

    return pl.pallas_call(
        _locked_dropout_kernel,
        out_shape=jax.ShapeDtypeStruct((B, T, H), x.dtype),
        grid_spec=pl.GridSpec(
            grid=grid,
            in_specs=[
                pl.BlockSpec((1, tT, H), lambda b, t: (b, t, 0)),   # x tile
                pl.BlockSpec((1, 1, H), lambda b, t: (b, 0, 0)),    # mask row
            ],
            out_specs=pl.BlockSpec((1, tT, H), lambda b, t: (b, t, 0)),
        ),
        compiler_params=pltpu.CompilerParams(
            # Independent grid steps -> let megacore (v7x) shard both axes.
            dimension_semantics=("parallel", "parallel"),
        ),
    )(x, mask)


if __name__ == "__main__":
    root = jax.random.PRNGKey(0)
    key_x, key_m = jax.random.split(root)

    B, T, H = 2, 16, 128
    x = jax.random.normal(key_x, (B, T, H), dtype=jnp.float32)
    p = 0.5

    y = jax.block_until_ready(locked_dropout(x, dropout=p, key=key_m,
                                             training=True))

    # Sanity checks of LockedDropout semantics.
    assert y.shape == x.shape and y.dtype == x.dtype

    # Exact reference: same key, same mask derivation as the wrapper.
    keep = 1.0 - p
    m_ref = jax.random.bernoulli(key_m, p=keep, shape=(B, 1, H))
    expected = x * (m_ref.astype(jnp.float32) * (1.0 / keep)).astype(x.dtype)
    assert bool(jnp.allclose(y, expected, atol=1e-6, rtol=1e-6))

    # Mask is "locked": zero pattern identical across the time axis.
    zero_pat = (y == 0)
    assert bool(jnp.all(zero_pat == zero_pat[:, :1, :]))

    # Eval mode / p == 0 pass-through.
    y_eval = jax.block_until_ready(
        locked_dropout(x, dropout=p, key=key_m, training=False))
    assert bool(jnp.array_equal(y_eval, x))
    y_p0 = jax.block_until_ready(
        locked_dropout(x, dropout=0.0, key=key_m, training=True))
    assert bool(jnp.array_equal(y_p0, x))

    print("KERNEL_OK")
</pallas_src>

<mosaic_0001>
module attributes {stable_mosaic.version = 11 : i64} {
  func.func @_locked_dropout_kernel(%arg0: i32, %arg1: i32, %arg2: memref<1x16x128xf32, #tpu.memory_space<vmem>>, %arg3: memref<1x1x128xf32, #tpu.memory_space<vmem>>, %arg4: memref<1x16x128xf32, #tpu.memory_space<vmem>>) attributes {dimension_semantics = [#tpu.dimension_semantics<parallel>, #tpu.dimension_semantics<parallel>], iteration_bounds = array<i64: 2, 1>, scalar_prefetch = 0 : i64, scratch_operands = 0 : i64, tpu.core_type = #tpu.core_type<tc>, window_params = [{transform_indices = @transform_0, window_bounds = array<i64: 1, 16, 128>}, {transform_indices = @transform_1, window_bounds = array<i64: 1, 1, 128>}, {transform_indices = @transform_2, window_bounds = array<i64: 1, 16, 128>}]} {
    %c0 = arith.constant 0 : index
    %c0_0 = arith.constant 0 : index
    %c0_1 = arith.constant 0 : index
    %0 = vector.load %arg2[%c0, %c0_0, %c0_1] : memref<1x16x128xf32, #tpu.memory_space<vmem>>, vector<1x16x128xf32>
    %c0_2 = arith.constant 0 : index
    %c0_3 = arith.constant 0 : index
    %c0_4 = arith.constant 0 : index
    %1 = vector.load %arg3[%c0_2, %c0_3, %c0_4] : memref<1x1x128xf32, #tpu.memory_space<vmem>>, vector<1x1x128xf32>
    %2 = vector.broadcast %1 : vector<1x1x128xf32> to vector<1x16x128xf32>
    %3 = arith.mulf %0, %2 : vector<1x16x128xf32>
    %c0_5 = arith.constant 0 : index
    %c0_6 = arith.constant 0 : index
    %c0_7 = arith.constant 0 : index
    %4 = vector.load %arg4[%c0_5, %c0_6, %c0_7] : memref<1x16x128xf32, #tpu.memory_space<vmem>>, vector<1x16x128xf32>
    tpu.vector_store %arg4[%c0_5, %c0_6, %c0_7], %3 {strides = array<i32>} : memref<1x16x128xf32, #tpu.memory_space<vmem>>, vector<1x16x128xf32>,
    return
  }
  func.func @transform_0(%arg0: i32, %arg1: i32) -> (i32, i32, i32) {
    %c0_i32 = arith.constant 0 : i32
    %c0_i32_0 = arith.constant 0 : i32
    return %arg0, %arg1, %c0_i32 : i32, i32, i32
  }
  func.func @transform_1(%arg0: i32, %arg1: i32) -> (i32, i32, i32) {
    %c0_i32 = arith.constant 0 : i32
    %c0_i32_0 = arith.constant 0 : i32
    %c0_i32_1 = arith.constant 0 : i32
    return %arg0, %c0_i32, %c0_i32_0 : i32, i32, i32
  }
  func.func @transform_2(%arg0: i32, %arg1: i32) -> (i32, i32, i32) {
    %c0_i32 = arith.constant 0 : i32
    %c0_i32_0 = arith.constant 0 : i32
    return %arg0, %arg1, %c0_i32 : i32, i32, i32
  }
}

</mosaic_0001>

<bundles_post_ra>
// kernel: tpu_custom_call.1
= control target key start
LH: loop header
LB: loop body
LE: loop exit
PB: predicated region body
PF: predicated region fallthrough
CT: control target
= control target key end

     0   :  { %7 = vsyncpa [#allocation3], 0  ;;  %s747_s0 = inlined_call_operand.hbm [shape: f32[2,16,128], index: 0, kind: input, shape index: {}]   ;;  %s748_s1 = inlined_call_operand.hbm [shape: f32[2,1,128], index: 1, kind: input, shape index: {}]   ;;  %s749_s2 = inlined_call_operand.hbm [shape: f32[2,16,128], index: 2, kind: output, shape index: {}]  }
   0x1   :  { %9 = vsyncpa [#allocation3 + $0x1], 0 }
   0x2   :  { %10 = vsyncpa [#allocation6], 0 }
   0x3   :  { %12 = vsyncpa [#allocation6 + $0x1], 0 }
   0x4   :  { %13 = vsyncpa [#allocation4], 0 }
   0x5   :  { %15 = vsyncpa [#allocation4 + $0x1], 0  ;;  %s609_s9 = smov 0   ;;  %s611_s10 = smov 0  }
   0x6   :  { %s613_s11 = smov 0   ;;  %s615_s12 = smov 0  }
   0x7   :  { %s617_s13 = smov 0   ;;  %s619_s14 = smov 0  }
   0x8 LB: > { %s353_s15 = sadd.s32 4294967295, %s588_s14   ;;  %s354_s16 = sadd.s32 4294967294, %s588_s14   ;;  %s588_s14 = sphi %s619_s14, %s21_s14   ;;  %s584_s13 = sphi %s617_s13, %s759_s13   ;;  %s580_s12 = sphi %s615_s12, %s758_s12   ;;  %s576_s11 = sphi %s613_s11, %s757_s11   ;;  %s572_s10 = sphi %s611_s10, %s756_s10   ;;  %s568_s9 = sphi %s609_s9, %s755_s9  }
   0x9   : > { %s33_s17 = sadd.s32 1, %s584_s13  ;;  %s42_s18 = sadd.s32 1, %s576_s11 }
   0xa   : > { %p35_p0 = scmp.ge.s32.totalorder %s33_s17, 2  ;;  %p49_p1 = scmp.ne.s32.totalorder %s576_s11, %s572_s10 }
   0xb   : > { %p50_p2 = scmp.eq.s32.totalorder %s588_s14, 0  ;;  %p55_p3 = scmp.ne.s32.totalorder %s572_s10, %s568_s9 }
   0xc   : > { %s761_s17 = smov (%p35_p0, %s33_s17), 0  ;;  %p56_p5 = scmp.eq.s32.totalorder %s353_s15, 0 }
   0xd   : > { %p650_p4 = por %p50_p2, %p49_p1  ;;  %s37_s20 = ssub.s32 %s584_s13, %s761_s17 }
   0xe   : > { %p107_p6 = scmp.eq.s32.totalorder %s353_s15, 1  ;;  %p40_p7 = scmp.eq.s32.totalorder %s37_s20, 0 }
   0xf   : > { %p656_p8 = por %p56_p5, %p55_p3  ;;  %p113_p10 = scmp.eq.s32.totalorder %s354_s16, 1 }
  0x10   : > { %p660_p9 = por %p107_p6, %p49_p1  ;;  %p356_p12 = scmp.ge.s32.totalorder %s588_s14, 2 }
  0x11   : > { %s665_s23 = scalar_select %p40_p7, %s576_s11, %s42_s18  }
  0x12   : > { %p667_p11 = por %p113_p10, %p55_p3  ;;  %p387_p13 = scmp.lt.s32.totalorder %s588_s14, 2 }
  0x13   : > { %s133_s25 = sand.u32 1, %s576_s11   ;;  %s368_s27 = sshll.u32 %s584_s13, 4 }
  0x14   : > { %s357_s26 = sshll.u32 %s133_s25, 4  ;;  %s144_s30 = scalar_lea.hbm %s747_s0, %s368_s27 }
  0x15   : > { %s137_s3 = scalar_lea.vmem [#allocation2], %s357_s26  ;;  %s145_s5 = sshll.u32 %s144_s30, 4  ;;  %s146_s5 = int_to_ptr.hbm [resolvable:$true] %s145_s5 }
  0x16   : > { %s147_s4 = sshll.u32 %s137_s3, 4  ;;  %p680_p0 = pnand %p387_p13, %p650_p4  ;;  %s148_s4 = int_to_ptr.vmem [resolvable:$true] %s147_s4 }
  0x17   : > { %p360_p1 = scmp.ge.s32.totalorder %s588_s14, 1  ;;  %s134_s7 = scalar_lea.sflag [#allocation3], %s133_s25 }
  0x18   : > { %s590_s8 = smov 128   ;;  %s591_s15 = smov 8  }
  0x19   : > { %379 = dma.hbm_to_vmem [thread:$0]  (!%p680_p0), %s146_s5, 256, %s148_s4, %s134_s7, %s590_s8, %s590_s8, %s591_s15  }
  0x1a   : > { %p172_p2 = scmp.lt.s32.totalorder %s588_s14, 3  ;;  %s163_s20 = scalar_lea.hbm %s748_s1, %s584_s13 }
  0x1b   : > { %s165_s26 = sshll.u32 %s163_s20, 4  ;;  %s160_s19 = scalar_lea.vmem [#allocation5], %s133_s25  ;;  %s166_s26 = int_to_ptr.hbm [resolvable:$true] %s165_s26 }
  0x1c   : > { %p173_p3 = pnand %p360_p1, %p172_p2  ;;  %s167_s27 = sshll.u32 %s160_s19, 4  ;;  %s168_s27 = int_to_ptr.vmem [resolvable:$true] %s167_s27 }
  0x1d   : > { %s158_s28 = scalar_lea.sflag [#allocation6], %s133_s25  ;;  %s695_s29 = sand.u32 (!%p173_p3), 1, %s572_s10  }
  0x1e   : > { %382 = dma.hbm_to_vmem [thread:$0]  (!%p680_p0), %s166_s26, 16, %s168_s27, %s158_s28  }
  0x1f   : > { %176 = sbr.rel (%p173_p3) target bundleno = 55 (0x37), region = 28  ;;  %s361_s30 = sshll.u32 (!%p173_p3), %s695_s29, 4 }
  0x20   : > { %s179_s3 = scalar_lea.sflag (!%p173_p3), [#allocation3], %s695_s29  ;;  %s182_s4 = scalar_lea.vmem (!%p173_p3), [#allocation2], %s361_s30 }
  0x24   : > { %555 = dma.done.wait (%p656_p8), %s179_s3, 256  }
  0x25   : > { %557 = vsyncadd (%p656_p8), %s179_s3, 4294967040  ;;  %s189_s25 = scalar_lea.sflag [#allocation6], %s695_s29  ;;  %s191_s5 = scalar_lea.vmem [#allocation5], %s695_s29 }
  0x26   : > { %559 = dma.done.wait (%p656_p8), %s189_s25, 16  }
  0x27   : > { %561 = vsyncadd (%p656_p8), %s189_s25, 4294967280  ;;  %s369_s6 = sshll.u32 %s580_s12, 4  ;;  %s216_s16 = scalar_lea.vmem [#allocation7], %s361_s30  ;;  %v219_v0 = vld [vmem:[%s182_s4] sm:$0xff]  ;;  %v220_v2 = vld [vmem:[%s182_s4 + $0x8] sm:$0xff] }
  0x28   : > { %s243_s15 = scalar_lea.hbm %s749_s2, %s369_s6  ;;  %s244_s18 = sshll.u32 %s216_s16, 4  ;;  %v441_v1 = vld [vmem:[%s191_s5] ss:$0 sm:$0xff]  ;;  %s245_s18 = int_to_ptr.vmem [resolvable:$true] %s244_s18 }
  0x29   : > { %s246_s20 = sshll.u32 %s243_s15, 4  ;;  %v225_v3 = vmul.f32 %v441_v1, %v219_v0  ;;  %v226_v4 = vmul.f32 %v441_v1, %v220_v2  ;;  %s230_s21 = scalar_lea.sflag [#allocation4], %s695_s29  ;;  %s247_s20 = int_to_ptr.hbm [resolvable:$true] %s246_s20 }
  0x2a   : > { %s516_s26 = sshra.s32 %s247_s20, 4  ;;  %s522_s28 = scalar_lea.hbm %s749_s2, 32  ;;  %s517_s26 = int_to_ptr.hbm [resolvable:$true] %s516_s26 }
  0x2b   : > { %227 = vst [vmem:[%s216_s16] sm:$0xff] %v225_v3  ;;  %s518_s12 = scalar_lea.hbm %s517_s26, 16  ;;  %p523_p7 = scmp.lt.s32.totalorder %s517_s26, %s749_s2 }
  0x2c   : > { %228 = vst [vmem:[%s216_s16 + $0x8] sm:$0xff] %v226_v4  ;;  %p519_p4 = scmp.ne.s32.totalorder %s517_s26, %s518_s12  ;;  %p524_p8 = scmp.lt.s32.totalorder %s522_s28, %s518_s12 }
  0x2e   : > { %p520_p5 = pnand %p519_p4, %p660_p9  ;;  %p525_p10 = por %p524_p8, %p523_p7 }
  0x30   : > { %p521_p6 = pneg %p520_p5 }
  0x32   : > { %p526_p13 = pnand %p525_p10, %p521_p6 }
  0x34   : > { %529 = shalt.err (!%p526_p13)
}
  0x35   : > { %s592_s29 = smov 128   ;;  %s593_s4 = smov 8  }
  0x36   : > { %374 = dma.vmem_to_hbm [thread:$0]  (%p660_p9), %s245_s18, 256, %s247_s20, %s230_s21, %s592_s29, %s592_s29, %s593_s4  }
  0x37 PF: > { %s261_s25 = sand.u32 1, %s568_s9   ;;  %p384_p0 = pnand %p356_p12, %p667_p11 }
  0x38   : > { %s262_s5 = scalar_lea.sflag [#allocation4], %s261_s25 }
  0x39   : > { %p385_p1 = pneg %p384_p0 }
  0x3b   : > { %563 = dma.done.wait (%p385_p1), %s262_s5, 256  }
  0x3c   : > { %565 = vsyncadd (%p385_p1), %s262_s5, 4294967040  ;;  %s21_s14 = sadd.s32 1, %s588_s14   ;;  %s755_s9 = smov %s572_s10 }
  0x3d   : > { %p18_p2 = scmp.ge.s32.totalorder %s21_s14, 4   ;;  %s756_s10 = smov %s576_s11 }
  0x3e   : > { %s757_s11 = smov %s665_s23  ;;  %s758_s12 = smov %s584_s13 }
  0x3f   : > { %s759_s13 = smov %s761_s17  ;;  %20 = sbr.rel (!%p18_p2) target bundleno = 8 (0x8), region = 86 }
  0x44   :  { %268 = vsyncpa [#allocation3], 1 }
  0x45   :  { %270 = vsyncpa [#allocation3 + $0x1], 1 }
  0x46   :  { %271 = vsyncpa [#allocation6], 1 }
  0x47   :  { %273 = vsyncpa [#allocation6 + $0x1], 1 }
  0x48   :  { %274 = vsyncpa [#allocation4], 1 }
  0x49   :  { %276 = vsyncpa [#allocation4 + $0x1], 1 }

</bundles_post_ra>
